<compile_context>
chip_gen: v5e
topology: v5e:2x2
jax: 0.10.0
libtpu: 0.0.40
codegen_flags: <defaults>
</compile_context>

<pallas_src>
import functools

import jax
import jax.numpy as jnp
from jax.experimental import pallas as pl
from jax.experimental.pallas import tpu as pltpu


def _round_up(v, m):
    return ((v + m - 1) // m) * m


def _vmem_limit_bytes(need_bytes):
    cap = 64 * 1024 * 1024  # conservative fallback (v7x physical per-TC)
    try:
        cap = int(pltpu.get_tpu_info().vmem_capacity_bytes)
    except Exception:  # pragma: no cover - info API unavailable
        pass
    limit = max(32 * 1024 * 1024, 2 * int(need_bytes))
    return int(min(limit, int(cap * 3 / 4)))


def _adaptive_layer_kernel(x_ref, w_ref, aw_ref, o_ref, acc_ref):
    # x_ref : (TB, TK)  bf16 batch x K tile
    # w_ref : (TK, TN)  bf16 K x output-feature tile of W^T
    # aw_ref: (8, TN)   fused coefficient table (see wrapper)
    # o_ref : (TB, TN)
    # acc_ref: (TB, TN) f32 accumulator scratch
    k = pl.program_id(2)

    @pl.when(k == 0)
    def _():
        acc_ref[...] = jnp.zeros_like(acc_ref)

    acc_ref[...] += jnp.dot(x_ref[...], w_ref[...],
                            preferred_element_type=jnp.float32)

    @pl.when(k == pl.num_programs(2) - 1)
    def _():
        c0 = aw_ref[0:1, :]      # a_sig + a_tanh   (additive constant)
        a_sig = aw_ref[1:2, :]   # a_sig
        a_silu = aw_ref[2:3, :]  # a_silu
        a_t2 = aw_ref[3:4, :]    # 2 * a_tanh
        a_re = aw_ref[4:5, :]    # a_relu + a_elu   (positive-branch slope)
        a_elu = aw_ref[5:6, :]   # a_elu            (negative branch, on p-1)
        bias = aw_ref[6:7, :]

        y = acc_ref[...] + bias
        # Single exp per element; sigmoid/tanh via approximate EUP reciprocals.
        #   sigmoid(y) = 1 - 1/(1+p),  tanh(y) = 1 - 2/(1+p^2),  elu-(y) = p - 1,  p = exp(y)
        p = jnp.exp(y)
        r1 = pl.reciprocal(1.0 + p, approx=True)
        r2 = pl.reciprocal(1.0 + p * p, approx=True)

        sy = a_silu * y
        out = c0 + sy
        out = out - (a_sig + sy) * r1
        out = out - a_t2 * r2
        out = out + jnp.where(y > 0.0, a_re * y, a_elu * (p - 1.0))
        o_ref[...] = out.astype(o_ref.dtype)


@functools.partial(jax.jit, static_argnames=("tile_b", "tile_n", "out_dtype"))
def adaptive_layer_forward(x, fc_w, fc_b, act_weights, attention_weights,
                           *, tile_b=256, tile_n=512, out_dtype=None):
    """x: (B, D_in); fc_w: (D_out, D_in) torch-style; fc_b: (D_out,);
    act_weights: (D_out, 5); attention_weights: (D_out,)."""
    B, D_in = x.shape
    D_out = fc_w.shape[0]
    out_dtype = x.dtype if out_dtype is None else out_dtype

    # ---- tiny parameter glue (plain JAX): fused coefficient table (8, D_out) ----
    nw = jax.nn.softmax(act_weights.astype(jnp.float32), axis=1)      # (D_out, 5)
    att = jax.nn.sigmoid(attention_weights.astype(jnp.float32))       # (D_out,)
    a = nw * att[:, None]                                             # relu,sig,tanh,elu,silu
    a_r, a_s, a_t, a_e, a_si = (a[:, i] for i in range(5))
    aw = jnp.stack([a_s + a_t,                 # row 0: additive constant
                    a_s,                       # row 1
                    a_si,                      # row 2
                    2.0 * a_t,                 # row 3
                    a_r + a_e,                 # row 4: positive-branch slope
                    a_e,                       # row 5: negative branch (p - 1)
                    fc_b.astype(jnp.float32),  # row 6: bias
                    jnp.zeros_like(a_r)],      # row 7: pad to 8 sublanes
                   axis=0)                                            # (8, D_out)
    w_t = fc_w.T.astype(jnp.float32)                                  # (D_in, D_out)

    # ---- tiling ----
    tile_b = _round_up(tile_b, 16)
    tile_n = _round_up(tile_n, 128)

    d_out_p = _round_up(D_out, 128)
    if d_out_p <= tile_n:
        tn = d_out_p
    else:
        tn = tile_n
        d_out_p = _round_up(d_out_p, tile_n)   # pad instead of shrinking tn

    tb = _round_up(B, 16) if B <= tile_b else tile_b
    b_p = _round_up(B, tb)

    if D_in <= 4096:                           # single-K step: fits VMEM comfortably in bf16
        tk, d_in_p = D_in, D_in
    else:                                      # K-tiled for very large D_in (v7x VMEM budget)
        tk = 2048
        d_in_p = _round_up(D_in, tk)

    # ---- pad (zeros are harmless for the matmul / zero-weighted lanes) and cast to bf16 ----
    x_p = x.astype(jnp.float32)
    if (b_p, d_in_p) != (B, D_in):
        x_p = jnp.pad(x_p, ((0, b_p - B), (0, d_in_p - D_in)))
    if (d_in_p, d_out_p) != (D_in, D_out):
        w_t = jnp.pad(w_t, ((0, d_in_p - D_in), (0, d_out_p - D_out)))
    if d_out_p != D_out:
        aw = jnp.pad(aw, ((0, 0), (0, d_out_p - D_out)))
    x_p = x_p.astype(jnp.bfloat16)
    w_t = w_t.astype(jnp.bfloat16)

    nj = d_out_p // tn
    ni = b_p // tb
    k_steps = d_in_p // tk

    # Loop order: keep the larger operand as the once-streamed one (constant block index
    # across the inner sweep). K (reduction) stays innermost / "arbitrary".
    if d_out_p >= b_p:
        grid = (nj, ni, k_steps)
        x_map = lambda j, i, k: (i, k)
        w_map = lambda j, i, k: (k, j)
        aw_map = lambda j, i, k: (0, j)
        o_map = lambda j, i, k: (i, j)
    else:
        grid = (ni, nj, k_steps)
        x_map = lambda i, j, k: (i, k)
        w_map = lambda i, j, k: (k, j)
        aw_map = lambda i, j, k: (0, j)
        o_map = lambda i, j, k: (i, j)

    need = (2 * (tb * tk + tk * tn) * 2            # double-buffered bf16 x / W tiles
            + 2 * 8 * tn * 4                       # coefficient table
            + 2 * tb * tn * jnp.dtype(out_dtype).itemsize   # output tile
            + tb * tn * 4)                         # f32 accumulator scratch

    out = pl.pallas_call(
        _adaptive_layer_kernel,
        out_shape=jax.ShapeDtypeStruct((b_p, d_out_p), out_dtype),
        grid_spec=pltpu.PrefetchScalarGridSpec(
            num_scalar_prefetch=0,
            grid=grid,
            in_specs=[
                pl.BlockSpec((tb, tk), x_map),
                pl.BlockSpec((tk, tn), w_map),
                pl.BlockSpec((8, tn), aw_map),
            ],
            out_specs=pl.BlockSpec((tb, tn), o_map),
            scratch_shapes=[pltpu.VMEM((tb, tn), jnp.float32)],
        ),
        compiler_params=pltpu.CompilerParams(
            dimension_semantics=("parallel", "parallel", "arbitrary"),
            vmem_limit_bytes=_vmem_limit_bytes(need),
        ),
    )(x_p, w_t, aw)
    return out[:B, :D_out]


def _reference(x, fc_w, fc_b, act_weights, attention_weights):
    # Matmul operands cast to bf16 to match the kernel's MXU precision choice;
    # everything else in f32.
    xb = x.astype(jnp.bfloat16).astype(jnp.float32)
    wb = fc_w.astype(jnp.bfloat16).astype(jnp.float32)
    y = xb @ wb.T + fc_b
    nw = jax.nn.softmax(act_weights, axis=1)
    att = jax.nn.sigmoid(attention_weights)[None, :]
    acts = [
        jnp.maximum(y, 0.0),
        jax.nn.sigmoid(y),
        jnp.tanh(y),
        jnp.where(y > 0, y, jnp.exp(y) - 1.0),
        y * jax.nn.sigmoid(y),
    ]
    out = jnp.zeros_like(y)
    for i, a in enumerate(acts):
        out = out + nw[None, :, i] * a * att
    return out


if __name__ == "__main__":
    key = jax.random.PRNGKey(0)

    def run_case(B, D_in, D_out):
        k1, k2, k3, k4 = jax.random.split(jax.random.fold_in(key, 131 * B + D_out), 4)
        x = jax.random.normal(k1, (B, D_in), jnp.float32)
        fc_w = jax.random.normal(k2, (D_out, D_in), jnp.float32) * 0.1   # nn.Linear weight
        fc_b = jax.random.normal(k3, (D_out,), jnp.float32) * 0.1        # nn.Linear bias
        act_w = jax.random.normal(k4, (D_out, 5), jnp.float32)           # AdaptiveActivation.weights
        att_w = jnp.ones((D_out,), jnp.float32)                          # attention_weights

        out = adaptive_layer_forward(x, fc_w, fc_b, act_w, att_w)
        out = jax.block_until_ready(out)
        ref = _reference(x, fc_w, fc_b, act_w, att_w)
        assert out.shape == ref.shape
        # Tolerance covers the approximate EUP reciprocals (~1e-3); structural
        # bugs would show errors ~0.1-1, far above this.
        err = float(jnp.max(jnp.abs(out - ref)))
        assert jnp.allclose(out, ref, atol=1e-2, rtol=1e-2), \
            f"mismatch vs reference, max err {err}"

    run_case(8, 32, 128)    # aligned shapes, D_out-outer order
    run_case(5, 32, 96)     # exercises the batch / D_out padding path
    run_case(320, 64, 128)  # B > D_out: swapped loop order + multi-tile batch + row padding
    print("KERNEL_OK")
</pallas_src>

<mosaic_0001>
module attributes {stable_mosaic.version = 11 : i64} {
  func.func @_adaptive_layer_kernel(%arg0: i32, %arg1: i32, %arg2: i32, %arg3: memref<16x32xbf16, #tpu.memory_space<vmem>>, %arg4: memref<32x128xbf16, #tpu.memory_space<vmem>>, %arg5: memref<8x128xf32, #tpu.memory_space<vmem>>, %arg6: memref<16x128xf32, #tpu.memory_space<vmem>>, %arg7: memref<16x128xf32, #tpu.memory_space<vmem>>) attributes {dimension_semantics = [#tpu.dimension_semantics<parallel>, #tpu.dimension_semantics<parallel>, #tpu.dimension_semantics<arbitrary>], iteration_bounds = array<i64: 1, 1, 1>, scalar_prefetch = 0 : i64, scratch_operands = 1 : i64, tpu.core_type = #tpu.core_type<tc>, window_params = [{transform_indices = @transform_0, window_bounds = array<i64: 16, 32>}, {transform_indices = @transform_1, window_bounds = array<i64: 32, 128>}, {transform_indices = @transform_2, window_bounds = array<i64: 8, 128>}, {transform_indices = @transform_3, window_bounds = array<i64: 16, 128>}]} {
    %c0_i32 = arith.constant 0 : i32
    %0 = arith.cmpi eq, %arg2, %c0_i32 : i32
    %1 = arith.extui %0 : i1 to i32
    %c0_i32_0 = arith.constant 0 : i32
    %2 = arith.cmpi ne, %1, %c0_i32_0 : i32
    scf.if %2 {
      %cst_10 = arith.constant 0.000000e+00 : f32
      %12 = vector.broadcast %cst_10 : f32 to vector<16x128xf32>
      %c0_11 = arith.constant 0 : index
      %c0_12 = arith.constant 0 : index
      %13 = vector.load %arg7[%c0_11, %c0_12] : memref<16x128xf32, #tpu.memory_space<vmem>>, vector<16x128xf32>
      tpu.vector_store %arg7[%c0_11, %c0_12], %12 {strides = array<i32>} : memref<16x128xf32, #tpu.memory_space<vmem>>, vector<16x128xf32>,
    } else {
    }
    %c0 = arith.constant 0 : index
    %c0_1 = arith.constant 0 : index
    %3 = vector.load %arg7[%c0, %c0_1] : memref<16x128xf32, #tpu.memory_space<vmem>>, vector<16x128xf32>
    %c0_2 = arith.constant 0 : index
    %c0_3 = arith.constant 0 : index
    %4 = vector.load %arg3[%c0_2, %c0_3] : memref<16x32xbf16, #tpu.memory_space<vmem>>, vector<16x32xbf16>
    %c0_4 = arith.constant 0 : index
    %c0_5 = arith.constant 0 : index
    %5 = vector.load %arg4[%c0_4, %c0_5] : memref<32x128xbf16, #tpu.memory_space<vmem>>, vector<32x128xbf16>
    %cst = arith.constant dense<0.000000e+00> : vector<16x128xf32>
    %6 = tpu.matmul %4, %5, %cst {dimension_numbers = #tpu.dot_dimension_numbers<[1], [0], [0], [1], [0, 0, 1, 1], [], []>} : vector<16x32xbf16>, vector<32x128xbf16>, vector<16x128xf32> -> vector<16x128xf32>
    %7 = arith.addf %3, %6 : vector<16x128xf32>
    %c0_6 = arith.constant 0 : index
    %c0_7 = arith.constant 0 : index
    %8 = vector.load %arg7[%c0_6, %c0_7] : memref<16x128xf32, #tpu.memory_space<vmem>>, vector<16x128xf32>
    tpu.vector_store %arg7[%c0_6, %c0_7], %7 {strides = array<i32>} : memref<16x128xf32, #tpu.memory_space<vmem>>, vector<16x128xf32>,
    %c0_i32_8 = arith.constant 0 : i32
    %9 = arith.cmpi eq, %arg2, %c0_i32_8 : i32
    %10 = arith.extui %9 : i1 to i32
    %c0_i32_9 = arith.constant 0 : i32
    %11 = arith.cmpi ne, %10, %c0_i32_9 : i32
    scf.if %11 {
      %c0_10 = arith.constant 0 : index
      %c0_11 = arith.constant 0 : index
      %12 = vector.load %arg5[%c0_10, %c0_11] : memref<8x128xf32, #tpu.memory_space<vmem>>, vector<1x128xf32>
      %c1 = arith.constant 1 : index
      %c0_12 = arith.constant 0 : index
      %13 = vector.load %arg5[%c1, %c0_12] : memref<8x128xf32, #tpu.memory_space<vmem>>, vector<1x128xf32>
      %c2 = arith.constant 2 : index
      %c0_13 = arith.constant 0 : index
      %14 = vector.load %arg5[%c2, %c0_13] : memref<8x128xf32, #tpu.memory_space<vmem>>, vector<1x128xf32>
      %c3 = arith.constant 3 : index
      %c0_14 = arith.constant 0 : index
      %15 = vector.load %arg5[%c3, %c0_14] : memref<8x128xf32, #tpu.memory_space<vmem>>, vector<1x128xf32>
      %c4 = arith.constant 4 : index
      %c0_15 = arith.constant 0 : index
      %16 = vector.load %arg5[%c4, %c0_15] : memref<8x128xf32, #tpu.memory_space<vmem>>, vector<1x128xf32>
      %c5 = arith.constant 5 : index
      %c0_16 = arith.constant 0 : index
      %17 = vector.load %arg5[%c5, %c0_16] : memref<8x128xf32, #tpu.memory_space<vmem>>, vector<1x128xf32>
      %c6 = arith.constant 6 : index
      %c0_17 = arith.constant 0 : index
      %18 = vector.load %arg5[%c6, %c0_17] : memref<8x128xf32, #tpu.memory_space<vmem>>, vector<1x128xf32>
      %c0_18 = arith.constant 0 : index
      %c0_19 = arith.constant 0 : index
      %19 = vector.load %arg7[%c0_18, %c0_19] : memref<16x128xf32, #tpu.memory_space<vmem>>, vector<16x128xf32>
      %20 = vector.broadcast %18 : vector<1x128xf32> to vector<16x128xf32>
      %21 = arith.addf %19, %20 : vector<16x128xf32>
      %22 = math.exp %21 : vector<16x128xf32>
      %cst_20 = arith.constant 1.000000e+00 : f32
      %23 = vector.broadcast %cst_20 : f32 to vector<16x128xf32>
      %24 = arith.addf %23, %22 : vector<16x128xf32>
      %25 = tpu.reciprocal %24 {approx = true} : vector<16x128xf32> -> vector<16x128xf32>
      %26 = arith.mulf %22, %22 : vector<16x128xf32>
      %cst_21 = arith.constant 1.000000e+00 : f32
      %27 = vector.broadcast %cst_21 : f32 to vector<16x128xf32>
      %28 = arith.addf %27, %26 : vector<16x128xf32>
      %29 = tpu.reciprocal %28 {approx = true} : vector<16x128xf32> -> vector<16x128xf32>
      %30 = vector.broadcast %14 : vector<1x128xf32> to vector<16x128xf32>
      %31 = arith.mulf %30, %21 : vector<16x128xf32>
      %32 = vector.broadcast %12 : vector<1x128xf32> to vector<16x128xf32>
      %33 = arith.addf %32, %31 : vector<16x128xf32>
      %34 = vector.broadcast %13 : vector<1x128xf32> to vector<16x128xf32>
      %35 = arith.addf %34, %31 : vector<16x128xf32>
      %36 = arith.mulf %35, %25 : vector<16x128xf32>
      %37 = arith.subf %33, %36 : vector<16x128xf32>
      %38 = vector.broadcast %15 : vector<1x128xf32> to vector<16x128xf32>
      %39 = arith.mulf %38, %29 : vector<16x128xf32>
      %40 = arith.subf %37, %39 : vector<16x128xf32>
      %cst_22 = arith.constant 0.000000e+00 : f32
      %41 = vector.broadcast %cst_22 : f32 to vector<16x128xf32>
      %42 = arith.cmpf ogt, %21, %41 : vector<16x128xf32>
      %43 = vector.broadcast %16 : vector<1x128xf32> to vector<16x128xf32>
      %44 = arith.mulf %43, %21 : vector<16x128xf32>
      %cst_23 = arith.constant 1.000000e+00 : f32
      %45 = vector.broadcast %cst_23 : f32 to vector<16x128xf32>
      %46 = arith.subf %22, %45 : vector<16x128xf32>
      %47 = vector.broadcast %17 : vector<1x128xf32> to vector<16x128xf32>
      %48 = arith.mulf %47, %46 : vector<16x128xf32>
      %49 = arith.select %42, %44, %48 : vector<16x128xi1>, vector<16x128xf32>
      %50 = arith.addf %40, %49 : vector<16x128xf32>
      %c0_24 = arith.constant 0 : index
      %c0_25 = arith.constant 0 : index
      %51 = vector.load %arg6[%c0_24, %c0_25] : memref<16x128xf32, #tpu.memory_space<vmem>>, vector<16x128xf32>
      tpu.vector_store %arg6[%c0_24, %c0_25], %50 {strides = array<i32>} : memref<16x128xf32, #tpu.memory_space<vmem>>, vector<16x128xf32>,
    } else {
    }
    return
  }
  func.func @transform_0(%arg0: i32, %arg1: i32, %arg2: i32) -> (i32, i32) {
    %c0_i32 = arith.constant 0 : i32
    return %arg1, %arg2 : i32, i32
  }
  func.func @transform_1(%arg0: i32, %arg1: i32, %arg2: i32) -> (i32, i32) {
    %c0_i32 = arith.constant 0 : i32
    return %arg2, %arg0 : i32, i32
  }
  func.func @transform_2(%arg0: i32, %arg1: i32, %arg2: i32) -> (i32, i32) {
    %c0_i32 = arith.constant 0 : i32
    %c0_i32_0 = arith.constant 0 : i32
    return %c0_i32, %arg0 : i32, i32
  }
  func.func @transform_3(%arg0: i32, %arg1: i32, %arg2: i32) -> (i32, i32) {
    %c0_i32 = arith.constant 0 : i32
    return %arg1, %arg0 : i32, i32
  }
}

</mosaic_0001>

<bundles_post_ra>
// kernel: adaptive_layer_forward.1
= control target key start
LH: loop header
LB: loop body
LE: loop exit
PB: predicated region body
PF: predicated region fallthrough
CT: control target
= control target key end

     0   :  { %vm46_vm0 = vcmask 261120   ;;  %s228_s1 = inlined_call_operand.vmem [shape: bf16[32,128], index: 1, kind: input, shape index: {}]   ;;  %s229_s2 = inlined_call_operand.vmem [shape: f32[8,128], index: 2, kind: input, shape index: {}]   ;;  %s230_s0 = inlined_call_operand.vmem [shape: bf16[16,32], index: 0, kind: input, shape index: {}]   ;;  %s231_s3 = inlined_call_operand.vmem [shape: f32[16,128], index: 3, kind: output, shape index: {}]  }
   0x1   :  { %v152_v0 = vld [vmem:[%s228_s1 + $0x8] sm:$0xff]  ;;  %v151_v1 = vld [vmem:[%s228_s1] sm:$0xff] }
   0x2   :  { %56 = vmatpush.bf16.msra.mxu0 %v152_v0  ;;  %v150_v2 = vld [vmem:[%s230_s0] sm:$0xff] }
   0x3   :  { %v153_v3 = vld [vmem:[%s229_s2 + $0x6] ss:$0 sm:$0xff]  ;;  %v154_v10 = vld [vmem:[%s229_s2 + $0x2] ss:$0 sm:$0xff]  ;;  %v156_v16 = vld [vmem:[%s229_s2 + $0x1] ss:$0 sm:$0xff] }
   0x4   :  { %v155_v17 = vld [vmem:[%s229_s2] ss:$0 sm:$0xff]  ;;  %v159_v19 = vld [vmem:[%s229_s2 + $0x5] ss:$0 sm:$0xff]  ;;  %v157_v22 = vld [vmem:[%s229_s2 + $0x3] ss:$0 sm:$0xff] }
   0x5   :  { %v158_v24 = vld [vmem:[%s229_s2 + $0x4] ss:$0 sm:$0xff] }
   0x6   :  { %57 = vmatpush.bf16.msra.mxu0 %v151_v1 }
   0x9   :  { %147 = vmatmul.msk.bf16.vlgmr.msra.gmra.mxu0 %vm46_vm0, %v150_v2 }
  0x86   :  { %v59_v4 = vpop.f32.mrf.mxu0 }
  0x87   :  { %v81_v5 = vadd.f32 %v153_v3, %v59_v4 }
  0x89   :  { %v83_v6 = vmul.f32 1.442695, %v81_v5  ;;  %v98_v15 = vmul.f32 %v154_v10, %v81_v5  ;;  %v118_v35 = vmul.f32 %v158_v24, %v81_v5  ;;  %vm115_vm1 = vcmp.gt.f32.partialorder %v81_v5, 0.0 }
  0x8b   :  { %160 = vpow2.f32 %v83_v6  ;;  %v104_v21 = vadd.f32 %v156_v16, %v98_v15  ;;  %v101_v27 = vadd.f32 %v155_v17, %v98_v15 }
  0x8e   :  { %v61_v7 = vpop.f32.mrf.mxu0 }
  0x8f   :  { %v82_v8 = vadd.f32 %v153_v3, %v61_v7 }
  0x91   :  { %v161_v9 = vpop.eup %160  ;;  %v85_v11 = vmul.f32 1.442695, %v82_v8  ;;  %v99_v34 = vmul.f32 %v154_v10, %v82_v8  ;;  %v119_v48 = vmul.f32 %v158_v24, %v82_v8  ;;  %vm116_vm2 = vcmp.gt.f32.partialorder %v82_v8, 0.0 }
  0x92   :  { %v87_v12 = vadd.f32 1.0, %v161_v9  ;;  %v91_v13 = vmul.f32 %v161_v9, %v161_v9  ;;  %v148_v18 = vadd.f32 -1.0, %v161_v9 }
  0x93   :  { %162 = vpow2.f32 %v85_v11  ;;  %v105_v40 = vadd.f32 %v156_v16, %v99_v34  ;;  %v102_v42 = vadd.f32 %v155_v17, %v99_v34 }
  0x94   :  { %164 = vrcp.f32 %v87_v12  ;;  %v93_v14 = vadd.f32 1.0, %v91_v13  ;;  %v123_v30 = vmul.f32 %v159_v19, %v148_v18 }
  0x96   :  { %166 = vrcp.f32 %v93_v14  ;;  %v125_v37 = vsel %vm115_vm1, %v118_v35, %v123_v30 }
  0x99   :  { %v163_v20 = vpop.eup %162 }
  0x9a   :  { %v165_v23 = vpop.eup %164  ;;  %v88_v25 = vadd.f32 1.0, %v163_v20  ;;  %v92_v26 = vmul.f32 %v163_v20, %v163_v20  ;;  %v149_v38 = vadd.f32 -1.0, %v163_v20 }
  0x9b   :  { %v106_v28 = vmul.f32 %v165_v23, %v104_v21 }
  0x9c   :  { %v167_v29 = vpop.eup %166  ;;  %168 = vrcp.f32 %v88_v25  ;;  %v94_v31 = vadd.f32 1.0, %v92_v26  ;;  %v124_v45 = vmul.f32 %v159_v19, %v149_v38 }
  0x9d   :  { %v108_v32 = vsub.f32 %v101_v27, %v106_v28  ;;  %v111_v33 = vmul.f32 %v167_v29, %v157_v22 }
  0x9e   :  { %170 = vrcp.f32 %v94_v31  ;;  %v126_v50 = vsel %vm116_vm2, %v119_v48, %v124_v45 }
  0x9f   :  { %v113_v36 = vsub.f32 %v108_v32, %v111_v33 }
  0xa1   :  { %v127_v39 = vadd.f32 %v125_v37, %v113_v36 }
  0xa2   :  { %v169_v41 = vpop.eup %168 }
  0xa3   :  { %129 = vst [vmem:[%s231_s3] sm:$0xff] %v127_v39  ;;  %v107_v43 = vmul.f32 %v169_v41, %v105_v40 }
  0xa4   :  { %v171_v44 = vpop.eup %170 }
  0xa5   :  { %v109_v46 = vsub.f32 %v102_v42, %v107_v43  ;;  %v112_v47 = vmul.f32 %v171_v44, %v157_v22 }
  0xa7   :  { %v114_v49 = vsub.f32 %v109_v46, %v112_v47 }
  0xa9   :  { %v128_v51 = vadd.f32 %v126_v50, %v114_v49 }
  0xab   :  { %130 = vst [vmem:[%s231_s3 + $0x8] sm:$0xff] %v128_v51 }

</bundles_post_ra>
